<compile_context>
chip_gen: v7x
topology: tpu7x:2x2x1
jax: 0.10.0
libtpu: 0.0.40
codegen_flags: <defaults>
</compile_context>

<pallas_src>
import functools
import math

import jax
import jax.numpy as jnp
from jax import lax
from jax.experimental import pallas as pl
from jax.experimental.pallas import tpu as pltpu


def mha_kernel(q_ref, k_ref, v_ref,
               wq_ref, bq_ref, wk_ref, bk_ref, wv_ref, bv_ref,
               wp_ref, bp_ref, o_ref, cat_ref,
               *, n_head, d_k, d_v, mxu_dtype):
    q = q_ref[0]   # (TQ, D)      compute_dtype
    k = k_ref[0]   # (L_KV, D)    compute_dtype
    v = v_ref[0]   # (L_KV, D)    compute_dtype

    # Fused projections over all heads: (L, D) @ (D, H*d).  bf16 operands hit
    # the bf16 MXU rate; accumulation is f32, bias add is f32, then the
    # activations are cast back down so the attention matmuls also run bf16.
    Q = (jnp.dot(q, wq_ref[...], preferred_element_type=jnp.float32)
         + bq_ref[...]).astype(mxu_dtype)
    K = (jnp.dot(k, wk_ref[...], preferred_element_type=jnp.float32)
         + bk_ref[...]).astype(mxu_dtype)
    V = (jnp.dot(v, wv_ref[...], preferred_element_type=jnp.float32)
         + bv_ref[...]).astype(mxu_dtype)

    scale = 1.0 / math.sqrt(d_k)
    contract_last = (((1,), (1,)), ((), ()))   # Q @ K^T without a K transpose

    # Per-head attention; each head's PV result is streamed into its column
    # slice of the VMEM scratch so the per-head (TQ, L_KV) temporaries die
    # immediately instead of all heads staying live for a concat.
    for h in range(n_head):
        Qh = Q[:, h * d_k:(h + 1) * d_k]       # (TQ, d_k)
        Kh = K[:, h * d_k:(h + 1) * d_k]       # (L_KV, d_k)
        Vh = V[:, h * d_v:(h + 1) * d_v]       # (L_KV, d_v)
        s = lax.dot_general(Qh, Kh, contract_last,
                            preferred_element_type=jnp.float32) * scale
        e = jnp.exp(s - jnp.max(s, axis=-1, keepdims=True))     # f32 softmax
        inv = pl.reciprocal(jnp.sum(e, axis=-1, keepdims=True), approx=True)
        p = (e * inv).astype(mxu_dtype)
        pv = jnp.dot(p, Vh, preferred_element_type=jnp.float32)
        cat_ref[:, h * d_v:(h + 1) * d_v] = pv.astype(cat_ref.dtype)

    # Single fused output projection + bias, once per (batch, q-tile) step.
    out = jnp.dot(cat_ref[...], wp_ref[...],
                  preferred_element_type=jnp.float32) + bp_ref[...]
    o_ref[0] = out.astype(o_ref.dtype)


def _pick_block_q(L_Q):
    """Largest convenient q tile (<=512, multiple of 8) that divides L_Q."""
    if L_Q <= 512:
        return L_Q
    for cand in (512, 448, 384, 320, 256, 192, 128, 64, 32, 16, 8):
        if L_Q % cand == 0:
            return cand
    # TODO(synk): pad L_Q up to a multiple of 256 instead of giving up on tiling.
    return L_Q


def multi_head_attention(querys, keys, values, params, *,
                         compute_dtype=jnp.float32, out_dtype=None,
                         block_q=None, weight_buffers=None):
    """Pallas MHA forward.

    compute_dtype=jnp.bfloat16 on v5e/v6e/v7x for bf16 MXU + halved DMA bytes.
    out_dtype defaults to compute_dtype (bf16 out halves writeback if allowed).
    weight_buffers=1 on v7x single-buffers the resident weights (pl.Buffered).
    """
    Wq, bq, Wk, bk, Wv, bv, Wp, bp = params
    B, L_Q, D = querys.shape
    _, L_KV, _ = keys.shape
    H, _, d_k = Wq.shape
    d_v = Wv.shape[-1]
    cd = compute_dtype
    od = cd if out_dtype is None else out_dtype

    if block_q is None:
        block_q = _pick_block_q(L_Q)
    assert L_Q % block_q == 0, "block_q must divide L_Q"
    n_q = L_Q // block_q

    # Flatten heads along the feature axis (head-major column order) so
    # cat(heads) @ Wp_flat == sum_h head_h @ Wp[h].
    Wq_f = jnp.transpose(Wq, (1, 0, 2)).reshape(D, H * d_k).astype(cd)
    Wk_f = jnp.transpose(Wk, (1, 0, 2)).reshape(D, H * d_k).astype(cd)
    Wv_f = jnp.transpose(Wv, (1, 0, 2)).reshape(D, H * d_v).astype(cd)
    Wp_f = Wp.reshape(H * d_v, D).astype(cd)
    bq_f = bq.reshape(1, H * d_k).astype(jnp.float32)
    bk_f = bk.reshape(1, H * d_k).astype(jnp.float32)
    bv_f = bv.reshape(1, H * d_v).astype(jnp.float32)
    bp_f = bp.reshape(1, D).astype(jnp.float32)

    args = (querys.astype(cd), keys.astype(cd), values.astype(cd),
            Wq_f, bq_f, Wk_f, bk_f, Wv_f, bv_f, Wp_f, bp_f)

    kernel = functools.partial(mha_kernel, n_head=H, d_k=d_k, d_v=d_v,
                               mxu_dtype=cd)

    const2 = lambda b, qi: (0, 0)   # weights: same block every step
    wmode = None if weight_buffers is None else pl.Buffered(weight_buffers)

    def wspec(shape):
        if wmode is None:
            return pl.BlockSpec(shape, const2)
        return pl.BlockSpec(shape, const2, pipeline_mode=wmode)

    # Working-set based VMEM limit (weights + double-buffered activations +
    # concat scratch + in-kernel temporaries), floored at the default scoped
    # limit and capped for v7x's 64 MiB VMEM.
    cd_b = jnp.dtype(cd).itemsize
    od_b = jnp.dtype(od).itemsize
    wb = 2 if weight_buffers is None else weight_buffers
    est = (
        (3 * D * H * d_k + H * d_v * D) * cd_b * wb        # weights
        + (2 * H * d_k + H * d_v + D) * 4 * wb             # biases (f32)
        + (block_q * D + 2 * L_KV * D) * cd_b * 2          # q/k/v double buffers
        + block_q * D * od_b * 2                           # output double buffer
        + block_q * H * d_v * cd_b                         # concat scratch
        + (block_q * H * d_k + 2 * L_KV * H * d_k) * cd_b  # projected Q/K/V
        + 2 * block_q * L_KV * 4                           # one head's scores/probs
    )
    vmem_limit = int(min(max(32 * 2**20, 2 * est), 64 * 2**20))

    return pl.pallas_call(
        kernel,
        out_shape=jax.ShapeDtypeStruct((B, L_Q, D), od),
        grid_spec=pltpu.PrefetchScalarGridSpec(
            num_scalar_prefetch=0,
            grid=(B, n_q),
            in_specs=[
                pl.BlockSpec((1, block_q, D), lambda b, qi: (b, qi, 0)),  # querys
                pl.BlockSpec((1, L_KV, D), lambda b, qi: (b, 0, 0)),      # keys
                pl.BlockSpec((1, L_KV, D), lambda b, qi: (b, 0, 0)),      # values
                wspec((D, H * d_k)),   # Wq_flat
                wspec((1, H * d_k)),   # bq_flat
                wspec((D, H * d_k)),   # Wk_flat
                wspec((1, H * d_k)),   # bk_flat
                wspec((D, H * d_v)),   # Wv_flat
                wspec((1, H * d_v)),   # bv_flat
                wspec((H * d_v, D)),   # Wp_flat
                wspec((1, D)),         # bp
            ],
            out_specs=pl.BlockSpec((1, block_q, D), lambda b, qi: (b, qi, 0)),
            scratch_shapes=[pltpu.VMEM((block_q, H * d_v), cd)],  # concat buffer
        ),
        compiler_params=pltpu.CompilerParams(
            dimension_semantics=("parallel", "parallel"),
            vmem_limit_bytes=vmem_limit),
    )(*args)
    # TODO(synk): for L_KV >= ~1k add an inner "arbitrary" L_KV grid axis with
    # flash-style online softmax so the full (block_q, L_KV) score matrix never
    # materializes (required for v7x's 64 MiB VMEM at L~2k, d_model~1k).


def mha_reference(querys, keys, values, params):
    """Plain-JAX reference mirroring the PyTorch forward."""
    Wq, bq, Wk, bk, Wv, bv, Wp, bp = params
    H, _, d_k = Wq.shape
    heads = []
    for h in range(H):
        Q = querys @ Wq[h] + bq[h]
        K = keys @ Wk[h] + bk[h]
        V = values @ Wv[h] + bv[h]
        s = (Q @ jnp.swapaxes(K, 1, 2)) / math.sqrt(d_k)
        p = jax.nn.softmax(s, axis=-1)
        heads.append(p @ V)
    cat = jnp.concatenate(heads, axis=-1)                  # (B, L_Q, H*d_v)
    return cat @ Wp.reshape(-1, Wp.shape[-1]) + bp


def init_params(key, n_head, d_model):
    d_k = d_model // n_head
    d_v = d_model // n_head
    ks = jax.random.split(key, 8)
    scale = 0.1
    Wq = jax.random.normal(ks[0], (n_head, d_model, d_k), jnp.float32) * scale
    bq = jax.random.normal(ks[1], (n_head, 1, d_k), jnp.float32) * scale
    Wk = jax.random.normal(ks[2], (n_head, d_model, d_k), jnp.float32) * scale
    bk = jax.random.normal(ks[3], (n_head, 1, d_k), jnp.float32) * scale
    Wv = jax.random.normal(ks[4], (n_head, d_model, d_v), jnp.float32) * scale
    bv = jax.random.normal(ks[5], (n_head, 1, d_v), jnp.float32) * scale
    Wp = jax.random.normal(ks[6], (n_head, d_v, d_model), jnp.float32) * scale
    bp = jax.random.normal(ks[7], (1, d_model), jnp.float32) * scale
    return (Wq, bq, Wk, bk, Wv, bv, Wp, bp)


if __name__ == "__main__":
    # Small shapes consistent with the module's forward.  (Note: these toy
    # sizes leave most of every vreg as padding; benchmark at d_model >= 512,
    # d_k = 128 per the lane-alignment guidance.)
    n_head, d_model = 4, 32
    B, L_Q, L_KV = 2, 8, 8

    key = jax.random.PRNGKey(0)
    k_q, k_k, k_v, k_p = jax.random.split(key, 4)
    querys = jax.random.normal(k_q, (B, L_Q, d_model), jnp.float32)
    keys = jax.random.normal(k_k, (B, L_KV, d_model), jnp.float32)
    values = jax.random.normal(k_v, (B, L_KV, d_model), jnp.float32)
    params = init_params(k_p, n_head, d_model)

    out = multi_head_attention(querys, keys, values, params)
    out = jax.block_until_ready(out)

    ref = jax.block_until_ready(mha_reference(querys, keys, values, params))
    assert out.shape == (B, L_Q, d_model)
    assert jnp.allclose(out, ref, rtol=1e-2, atol=1e-2), (
        f"max abs diff = {jnp.max(jnp.abs(out - ref))}")

    print("KERNEL_OK")
</pallas_src>

<mosaic_0001>
module attributes {stable_mosaic.version = 11 : i64} {
  func.func @mha_kernel(%arg0: i32, %arg1: i32, %arg2: memref<1x8x32xf32, #tpu.memory_space<vmem>>, %arg3: memref<1x8x32xf32, #tpu.memory_space<vmem>>, %arg4: memref<1x8x32xf32, #tpu.memory_space<vmem>>, %arg5: memref<32x32xf32, #tpu.memory_space<vmem>>, %arg6: memref<1x32xf32, #tpu.memory_space<vmem>>, %arg7: memref<32x32xf32, #tpu.memory_space<vmem>>, %arg8: memref<1x32xf32, #tpu.memory_space<vmem>>, %arg9: memref<32x32xf32, #tpu.memory_space<vmem>>, %arg10: memref<1x32xf32, #tpu.memory_space<vmem>>, %arg11: memref<32x32xf32, #tpu.memory_space<vmem>>, %arg12: memref<1x32xf32, #tpu.memory_space<vmem>>, %arg13: memref<1x8x32xf32, #tpu.memory_space<vmem>>, %arg14: memref<8x32xf32, #tpu.memory_space<vmem>>) attributes {dimension_semantics = [#tpu.dimension_semantics<parallel>, #tpu.dimension_semantics<parallel>], iteration_bounds = array<i64: 2, 1>, scalar_prefetch = 0 : i64, scratch_operands = 1 : i64, tpu.core_type = #tpu.core_type<tc>, window_params = [{transform_indices = @transform_0, window_bounds = array<i64: 1, 8, 32>}, {transform_indices = @transform_1, window_bounds = array<i64: 1, 8, 32>}, {transform_indices = @transform_2, window_bounds = array<i64: 1, 8, 32>}, {pipeline_mode = #tpu.pipeline_mode<synchronous>, transform_indices = @transform_3, window_bounds = array<i64: 32, 32>}, {pipeline_mode = #tpu.pipeline_mode<synchronous>, transform_indices = @transform_4, window_bounds = array<i64: 1, 32>}, {pipeline_mode = #tpu.pipeline_mode<synchronous>, transform_indices = @transform_5, window_bounds = array<i64: 32, 32>}, {pipeline_mode = #tpu.pipeline_mode<synchronous>, transform_indices = @transform_6, window_bounds = array<i64: 1, 32>}, {pipeline_mode = #tpu.pipeline_mode<synchronous>, transform_indices = @transform_7, window_bounds = array<i64: 32, 32>}, {pipeline_mode = #tpu.pipeline_mode<synchronous>, transform_indices = @transform_8, window_bounds = array<i64: 1, 32>}, {pipeline_mode = #tpu.pipeline_mode<synchronous>, transform_indices = @transform_9, window_bounds = array<i64: 32, 32>}, {pipeline_mode = #tpu.pipeline_mode<synchronous>, transform_indices = @transform_10, window_bounds = array<i64: 1, 32>}, {transform_indices = @transform_11, window_bounds = array<i64: 1, 8, 32>}]} {
    %c0 = arith.constant 0 : index
    %c0_0 = arith.constant 0 : index
    %c0_1 = arith.constant 0 : index
    %0 = vector.load %arg2[%c0, %c0_0, %c0_1] : memref<1x8x32xf32, #tpu.memory_space<vmem>>, vector<1x8x32xf32>
    %1 = vector.shape_cast %0 : vector<1x8x32xf32> to vector<8x32xf32>
    %c0_2 = arith.constant 0 : index
    %c0_3 = arith.constant 0 : index
    %c0_4 = arith.constant 0 : index
    %2 = vector.load %arg3[%c0_2, %c0_3, %c0_4] : memref<1x8x32xf32, #tpu.memory_space<vmem>>, vector<1x8x32xf32>
    %3 = vector.shape_cast %2 : vector<1x8x32xf32> to vector<8x32xf32>
    %c0_5 = arith.constant 0 : index
    %c0_6 = arith.constant 0 : index
    %c0_7 = arith.constant 0 : index
    %4 = vector.load %arg4[%c0_5, %c0_6, %c0_7] : memref<1x8x32xf32, #tpu.memory_space<vmem>>, vector<1x8x32xf32>
    %5 = vector.shape_cast %4 : vector<1x8x32xf32> to vector<8x32xf32>
    %c0_8 = arith.constant 0 : index
    %c0_9 = arith.constant 0 : index
    %6 = vector.load %arg5[%c0_8, %c0_9] : memref<32x32xf32, #tpu.memory_space<vmem>>, vector<32x32xf32>
    %cst = arith.constant dense<0.000000e+00> : vector<8x32xf32>
    %7 = tpu.matmul %1, %6, %cst {dimension_numbers = #tpu.dot_dimension_numbers<[1], [0], [0], [1], [0, 0, 1, 1], [], []>} : vector<8x32xf32>, vector<32x32xf32>, vector<8x32xf32> -> vector<8x32xf32>
    %c0_10 = arith.constant 0 : index
    %c0_11 = arith.constant 0 : index
    %8 = vector.load %arg6[%c0_10, %c0_11] : memref<1x32xf32, #tpu.memory_space<vmem>>, vector<1x32xf32>
    %9 = vector.broadcast %8 : vector<1x32xf32> to vector<8x32xf32>
    %10 = arith.addf %7, %9 : vector<8x32xf32>
    %c0_12 = arith.constant 0 : index
    %c0_13 = arith.constant 0 : index
    %11 = vector.load %arg7[%c0_12, %c0_13] : memref<32x32xf32, #tpu.memory_space<vmem>>, vector<32x32xf32>
    %cst_14 = arith.constant dense<0.000000e+00> : vector<8x32xf32>
    %12 = tpu.matmul %3, %11, %cst_14 {dimension_numbers = #tpu.dot_dimension_numbers<[1], [0], [0], [1], [0, 0, 1, 1], [], []>} : vector<8x32xf32>, vector<32x32xf32>, vector<8x32xf32> -> vector<8x32xf32>
    %c0_15 = arith.constant 0 : index
    %c0_16 = arith.constant 0 : index
    %13 = vector.load %arg8[%c0_15, %c0_16] : memref<1x32xf32, #tpu.memory_space<vmem>>, vector<1x32xf32>
    %14 = vector.broadcast %13 : vector<1x32xf32> to vector<8x32xf32>
    %15 = arith.addf %12, %14 : vector<8x32xf32>
    %c0_17 = arith.constant 0 : index
    %c0_18 = arith.constant 0 : index
    %16 = vector.load %arg9[%c0_17, %c0_18] : memref<32x32xf32, #tpu.memory_space<vmem>>, vector<32x32xf32>
    %cst_19 = arith.constant dense<0.000000e+00> : vector<8x32xf32>
    %17 = tpu.matmul %5, %16, %cst_19 {dimension_numbers = #tpu.dot_dimension_numbers<[1], [0], [0], [1], [0, 0, 1, 1], [], []>} : vector<8x32xf32>, vector<32x32xf32>, vector<8x32xf32> -> vector<8x32xf32>
    %c0_20 = arith.constant 0 : index
    %c0_21 = arith.constant 0 : index
    %18 = vector.load %arg10[%c0_20, %c0_21] : memref<1x32xf32, #tpu.memory_space<vmem>>, vector<1x32xf32>
    %19 = vector.broadcast %18 : vector<1x32xf32> to vector<8x32xf32>
    %20 = arith.addf %17, %19 : vector<8x32xf32>
    %21 = vector.extract_strided_slice %10 {offsets = [0, 0], sizes = [8, 8], strides = [1, 1]} : vector<8x32xf32> to vector<8x8xf32>
    %22 = vector.extract_strided_slice %15 {offsets = [0, 0], sizes = [8, 8], strides = [1, 1]} : vector<8x32xf32> to vector<8x8xf32>
    %23 = vector.extract_strided_slice %20 {offsets = [0, 0], sizes = [8, 8], strides = [1, 1]} : vector<8x32xf32> to vector<8x8xf32>
    %cst_22 = arith.constant dense<0.000000e+00> : vector<8x8xf32>
    %24 = tpu.matmul %21, %22, %cst_22 {dimension_numbers = #tpu.dot_dimension_numbers<[1], [1], [0], [0], [0, 0, 1, 0], [], []>} : vector<8x8xf32>, vector<8x8xf32>, vector<8x8xf32> -> vector<8x8xf32>
    %cst_23 = arith.constant 0.353553385 : f32
    %25 = vector.broadcast %cst_23 : f32 to vector<8x8xf32>
    %26 = arith.mulf %24, %25 : vector<8x8xf32>
    %cst_24 = arith.constant dense<0xFF800000> : vector<8xf32>
    %27 = vector.multi_reduction <maximumf>, %26, %cst_24 [1] : vector<8x8xf32> to vector<8xf32>
    %28 = vector.shape_cast %27 : vector<8xf32> to vector<8x1xf32>
    %29 = vector.broadcast %28 : vector<8x1xf32> to vector<8x8xf32>
    %30 = arith.subf %26, %29 : vector<8x8xf32>
    %31 = math.exp %30 : vector<8x8xf32>
    %cst_25 = arith.constant dense<0.000000e+00> : vector<8xf32>
    %32 = vector.multi_reduction <add>, %31, %cst_25 [1] : vector<8x8xf32> to vector<8xf32>
    %33 = vector.shape_cast %32 : vector<8xf32> to vector<8x1xf32>
    %34 = tpu.reciprocal %33 {approx = true} : vector<8x1xf32> -> vector<8x1xf32>
    %35 = vector.broadcast %34 : vector<8x1xf32> to vector<8x8xf32>
    %36 = arith.mulf %31, %35 : vector<8x8xf32>
    %cst_26 = arith.constant dense<0.000000e+00> : vector<8x8xf32>
    %37 = tpu.matmul %36, %23, %cst_26 {dimension_numbers = #tpu.dot_dimension_numbers<[1], [0], [0], [1], [0, 0, 1, 1], [], []>} : vector<8x8xf32>, vector<8x8xf32>, vector<8x8xf32> -> vector<8x8xf32>
    %c0_27 = arith.constant 0 : index
    %c0_28 = arith.constant 0 : index
    %38 = vector.load %arg14[%c0_27, %c0_28] : memref<8x32xf32, #tpu.memory_space<vmem>>, vector<8x8xf32>
    tpu.vector_store %arg14[%c0_27, %c0_28], %37 {strides = array<i32>} : memref<8x32xf32, #tpu.memory_space<vmem>>, vector<8x8xf32>,
    %39 = vector.extract_strided_slice %10 {offsets = [0, 8], sizes = [8, 8], strides = [1, 1]} : vector<8x32xf32> to vector<8x8xf32>
    %40 = vector.extract_strided_slice %15 {offsets = [0, 8], sizes = [8, 8], strides = [1, 1]} : vector<8x32xf32> to vector<8x8xf32>
    %41 = vector.extract_strided_slice %20 {offsets = [0, 8], sizes = [8, 8], strides = [1, 1]} : vector<8x32xf32> to vector<8x8xf32>
    %cst_29 = arith.constant dense<0.000000e+00> : vector<8x8xf32>
    %42 = tpu.matmul %39, %40, %cst_29 {dimension_numbers = #tpu.dot_dimension_numbers<[1], [1], [0], [0], [0, 0, 1, 0], [], []>} : vector<8x8xf32>, vector<8x8xf32>, vector<8x8xf32> -> vector<8x8xf32>
    %cst_30 = arith.constant 0.353553385 : f32
    %43 = vector.broadcast %cst_30 : f32 to vector<8x8xf32>
    %44 = arith.mulf %42, %43 : vector<8x8xf32>
    %cst_31 = arith.constant dense<0xFF800000> : vector<8xf32>
    %45 = vector.multi_reduction <maximumf>, %44, %cst_31 [1] : vector<8x8xf32> to vector<8xf32>
    %46 = vector.shape_cast %45 : vector<8xf32> to vector<8x1xf32>
    %47 = vector.broadcast %46 : vector<8x1xf32> to vector<8x8xf32>
    %48 = arith.subf %44, %47 : vector<8x8xf32>
    %49 = math.exp %48 : vector<8x8xf32>
    %cst_32 = arith.constant dense<0.000000e+00> : vector<8xf32>
    %50 = vector.multi_reduction <add>, %49, %cst_32 [1] : vector<8x8xf32> to vector<8xf32>
    %51 = vector.shape_cast %50 : vector<8xf32> to vector<8x1xf32>
    %52 = tpu.reciprocal %51 {approx = true} : vector<8x1xf32> -> vector<8x1xf32>
    %53 = vector.broadcast %52 : vector<8x1xf32> to vector<8x8xf32>
    %54 = arith.mulf %49, %53 : vector<8x8xf32>
    %cst_33 = arith.constant dense<0.000000e+00> : vector<8x8xf32>
    %55 = tpu.matmul %54, %41, %cst_33 {dimension_numbers = #tpu.dot_dimension_numbers<[1], [0], [0], [1], [0, 0, 1, 1], [], []>} : vector<8x8xf32>, vector<8x8xf32>, vector<8x8xf32> -> vector<8x8xf32>
    %c0_34 = arith.constant 0 : index
    %c8 = arith.constant 8 : index
    %56 = vector.load %arg14[%c0_34, %c8] : memref<8x32xf32, #tpu.memory_space<vmem>>, vector<8x8xf32>
    tpu.vector_store %arg14[%c0_34, %c8], %55 {strides = array<i32>} : memref<8x32xf32, #tpu.memory_space<vmem>>, vector<8x8xf32>,
    %57 = vector.extract_strided_slice %10 {offsets = [0, 16], sizes = [8, 8], strides = [1, 1]} : vector<8x32xf32> to vector<8x8xf32>
    %58 = vector.extract_strided_slice %15 {offsets = [0, 16], sizes = [8, 8], strides = [1, 1]} : vector<8x32xf32> to vector<8x8xf32>
    %59 = vector.extract_strided_slice %20 {offsets = [0, 16], sizes = [8, 8], strides = [1, 1]} : vector<8x32xf32> to vector<8x8xf32>
    %cst_35 = arith.constant dense<0.000000e+00> : vector<8x8xf32>
    %60 = tpu.matmul %57, %58, %cst_35 {dimension_numbers = #tpu.dot_dimension_numbers<[1], [1], [0], [0], [0, 0, 1, 0], [], []>} : vector<8x8xf32>, vector<8x8xf32>, vector<8x8xf32> -> vector<8x8xf32>
    %cst_36 = arith.constant 0.353553385 : f32
    %61 = vector.broadcast %cst_36 : f32 to vector<8x8xf32>
    %62 = arith.mulf %60, %61 : vector<8x8xf32>
    %cst_37 = arith.constant dense<0xFF800000> : vector<8xf32>
    %63 = vector.multi_reduction <maximumf>, %62, %cst_37 [1] : vector<8x8xf32> to vector<8xf32>
    %64 = vector.shape_cast %63 : vector<8xf32> to vector<8x1xf32>
    %65 = vector.broadcast %64 : vector<8x1xf32> to vector<8x8xf32>
    %66 = arith.subf %62, %65 : vector<8x8xf32>
    %67 = math.exp %66 : vector<8x8xf32>
    %cst_38 = arith.constant dense<0.000000e+00> : vector<8xf32>
    %68 = vector.multi_reduction <add>, %67, %cst_38 [1] : vector<8x8xf32> to vector<8xf32>
    %69 = vector.shape_cast %68 : vector<8xf32> to vector<8x1xf32>
    %70 = tpu.reciprocal %69 {approx = true} : vector<8x1xf32> -> vector<8x1xf32>
    %71 = vector.broadcast %70 : vector<8x1xf32> to vector<8x8xf32>
    %72 = arith.mulf %67, %71 : vector<8x8xf32>
    %cst_39 = arith.constant dense<0.000000e+00> : vector<8x8xf32>
    %73 = tpu.matmul %72, %59, %cst_39 {dimension_numbers = #tpu.dot_dimension_numbers<[1], [0], [0], [1], [0, 0, 1, 1], [], []>} : vector<8x8xf32>, vector<8x8xf32>, vector<8x8xf32> -> vector<8x8xf32>
    %c0_40 = arith.constant 0 : index
    %c16 = arith.constant 16 : index
    %74 = vector.load %arg14[%c0_40, %c16] : memref<8x32xf32, #tpu.memory_space<vmem>>, vector<8x8xf32>
    tpu.vector_store %arg14[%c0_40, %c16], %73 {strides = array<i32>} : memref<8x32xf32, #tpu.memory_space<vmem>>, vector<8x8xf32>,
    %75 = vector.extract_strided_slice %10 {offsets = [0, 24], sizes = [8, 8], strides = [1, 1]} : vector<8x32xf32> to vector<8x8xf32>
    %76 = vector.extract_strided_slice %15 {offsets = [0, 24], sizes = [8, 8], strides = [1, 1]} : vector<8x32xf32> to vector<8x8xf32>
    %77 = vector.extract_strided_slice %20 {offsets = [0, 24], sizes = [8, 8], strides = [1, 1]} : vector<8x32xf32> to vector<8x8xf32>
    %cst_41 = arith.constant dense<0.000000e+00> : vector<8x8xf32>
    %78 = tpu.matmul %75, %76, %cst_41 {dimension_numbers = #tpu.dot_dimension_numbers<[1], [1], [0], [0], [0, 0, 1, 0], [], []>} : vector<8x8xf32>, vector<8x8xf32>, vector<8x8xf32> -> vector<8x8xf32>
    %cst_42 = arith.constant 0.353553385 : f32
    %79 = vector.broadcast %cst_42 : f32 to vector<8x8xf32>
    %80 = arith.mulf %78, %79 : vector<8x8xf32>
    %cst_43 = arith.constant dense<0xFF800000> : vector<8xf32>
    %81 = vector.multi_reduction <maximumf>, %80, %cst_43 [1] : vector<8x8xf32> to vector<8xf32>
    %82 = vector.shape_cast %81 : vector<8xf32> to vector<8x1xf32>
    %83 = vector.broadcast %82 : vector<8x1xf32> to vector<8x8xf32>
    %84 = arith.subf %80, %83 : vector<8x8xf32>
    %85 = math.exp %84 : vector<8x8xf32>
    %cst_44 = arith.constant dense<0.000000e+00> : vector<8xf32>
    %86 = vector.multi_reduction <add>, %85, %cst_44 [1] : vector<8x8xf32> to vector<8xf32>
    %87 = vector.shape_cast %86 : vector<8xf32> to vector<8x1xf32>
    %88 = tpu.reciprocal %87 {approx = true} : vector<8x1xf32> -> vector<8x1xf32>
    %89 = vector.broadcast %88 : vector<8x1xf32> to vector<8x8xf32>
    %90 = arith.mulf %85, %89 : vector<8x8xf32>
    %cst_45 = arith.constant dense<0.000000e+00> : vector<8x8xf32>
    %91 = tpu.matmul %90, %77, %cst_45 {dimension_numbers = #tpu.dot_dimension_numbers<[1], [0], [0], [1], [0, 0, 1, 1], [], []>} : vector<8x8xf32>, vector<8x8xf32>, vector<8x8xf32> -> vector<8x8xf32>
    %c0_46 = arith.constant 0 : index
    %c24 = arith.constant 24 : index
    %92 = vector.load %arg14[%c0_46, %c24] : memref<8x32xf32, #tpu.memory_space<vmem>>, vector<8x8xf32>
    tpu.vector_store %arg14[%c0_46, %c24], %91 {strides = array<i32>} : memref<8x32xf32, #tpu.memory_space<vmem>>, vector<8x8xf32>,
    %c0_47 = arith.constant 0 : index
    %c0_48 = arith.constant 0 : index
    %93 = vector.load %arg14[%c0_47, %c0_48] : memref<8x32xf32, #tpu.memory_space<vmem>>, vector<8x32xf32>
    %c0_49 = arith.constant 0 : index
    %c0_50 = arith.constant 0 : index
    %94 = vector.load %arg11[%c0_49, %c0_50] : memref<32x32xf32, #tpu.memory_space<vmem>>, vector<32x32xf32>
    %cst_51 = arith.constant dense<0.000000e+00> : vector<8x32xf32>
    %95 = tpu.matmul %93, %94, %cst_51 {dimension_numbers = #tpu.dot_dimension_numbers<[1], [0], [0], [1], [0, 0, 1, 1], [], []>} : vector<8x32xf32>, vector<32x32xf32>, vector<8x32xf32> -> vector<8x32xf32>
    %c0_52 = arith.constant 0 : index
    %c0_53 = arith.constant 0 : index
    %96 = vector.load %arg12[%c0_52, %c0_53] : memref<1x32xf32, #tpu.memory_space<vmem>>, vector<1x32xf32>
    %97 = vector.broadcast %96 : vector<1x32xf32> to vector<8x32xf32>
    %98 = arith.addf %95, %97 : vector<8x32xf32>
    %c0_54 = arith.constant 0 : index
    %c0_55 = arith.constant 0 : index
    %c0_56 = arith.constant 0 : index
    %99 = vector.load %arg13[%c0_54, %c0_55, %c0_56] : memref<1x8x32xf32, #tpu.memory_space<vmem>>, vector<1x8x32xf32>
    %100 = vector.shape_cast %99 : vector<1x8x32xf32> to vector<8x32xf32>
    %101 = vector.shape_cast %98 : vector<8x32xf32> to vector<1x8x32xf32>
    tpu.vector_store %arg13[%c0_54, %c0_55, %c0_56], %101 {strides = array<i32>} : memref<1x8x32xf32, #tpu.memory_space<vmem>>, vector<1x8x32xf32>,
    return
  }
  func.func @transform_0(%arg0: i32, %arg1: i32) -> (i32, i32, i32) {
    %c0_i32 = arith.constant 0 : i32
    %c0_i32_0 = arith.constant 0 : i32
    return %arg0, %arg1, %c0_i32 : i32, i32, i32
  }
  func.func @transform_1(%arg0: i32, %arg1: i32) -> (i32, i32, i32) {
    %c0_i32 = arith.constant 0 : i32
    %c0_i32_0 = arith.constant 0 : i32
    %c0_i32_1 = arith.constant 0 : i32
    return %arg0, %c0_i32, %c0_i32_0 : i32, i32, i32
  }
  func.func @transform_2(%arg0: i32, %arg1: i32) -> (i32, i32, i32) {
    %c0_i32 = arith.constant 0 : i32
    %c0_i32_0 = arith.constant 0 : i32
    %c0_i32_1 = arith.constant 0 : i32
    return %arg0, %c0_i32, %c0_i32_0 : i32, i32, i32
  }
  func.func @transform_3(%arg0: i32, %arg1: i32) -> (i32, i32) {
    %c0_i32 = arith.constant 0 : i32
    %c0_i32_0 = arith.constant 0 : i32
    %c0_i32_1 = arith.constant 0 : i32
    return %c0_i32, %c0_i32_0 : i32, i32
  }
  func.func @transform_4(%arg0: i32, %arg1: i32) -> (i32, i32) {
    %c0_i32 = arith.constant 0 : i32
    %c0_i32_0 = arith.constant 0 : i32
    %c0_i32_1 = arith.constant 0 : i32
    return %c0_i32, %c0_i32_0 : i32, i32
  }
  func.func @transform_5(%arg0: i32, %arg1: i32) -> (i32, i32) {
    %c0_i32 = arith.constant 0 : i32
    %c0_i32_0 = arith.constant 0 : i32
    %c0_i32_1 = arith.constant 0 : i32
    return %c0_i32, %c0_i32_0 : i32, i32
  }
  func.func @transform_6(%arg0: i32, %arg1: i32) -> (i32, i32) {
    %c0_i32 = arith.constant 0 : i32
    %c0_i32_0 = arith.constant 0 : i32
    %c0_i32_1 = arith.constant 0 : i32
    return %c0_i32, %c0_i32_0 : i32, i32
  }
  func.func @transform_7(%arg0: i32, %arg1: i32) -> (i32, i32) {
    %c0_i32 = arith.constant 0 : i32
    %c0_i32_0 = arith.constant 0 : i32
    %c0_i32_1 = arith.constant 0 : i32
    return %c0_i32, %c0_i32_0 : i32, i32
  }
  func.func @transform_8(%arg0: i32, %arg1: i32) -> (i32, i32) {
    %c0_i32 = arith.constant 0 : i32
    %c0_i32_0 = arith.constant 0 : i32
    %c0_i32_1 = arith.constant 0 : i32
    return %c0_i32, %c0_i32_0 : i32, i32
  }
  func.func @transform_9(%arg0: i32, %arg1: i32) -> (i32, i32) {
    %c0_i32 = arith.constant 0 : i32
    %c0_i32_0 = arith.constant 0 : i32
    %c0_i32_1 = arith.constant 0 : i32
    return %c0_i32, %c0_i32_0 : i32, i32
  }
  func.func @transform_10(%arg0: i32, %arg1: i32) -> (i32, i32) {
    %c0_i32 = arith.constant 0 : i32
    %c0_i32_0 = arith.constant 0 : i32
    %c0_i32_1 = arith.constant 0 : i32
    return %c0_i32, %c0_i32_0 : i32, i32
  }
  func.func @transform_11(%arg0: i32, %arg1: i32) -> (i32, i32, i32) {
    %c0_i32 = arith.constant 0 : i32
    %c0_i32_0 = arith.constant 0 : i32
    return %arg0, %arg1, %c0_i32 : i32, i32, i32
  }
}

</mosaic_0001>

<bundles_post_ra>
// kernel: tpu_custom_call.1
= control target key start
LH: loop header
LB: loop body
LE: loop exit
PB: predicated region body
PF: predicated region fallthrough
CT: control target
= control target key end

     0   :  { %s2939_s0 = inlined_call_operand.hbm [shape: f32[2,8,32], index: 0, kind: input, shape index: {}]   ;;  %s2940_s1 = inlined_call_operand.hbm [shape: f32[2,8,32], index: 1, kind: input, shape index: {}]   ;;  %s2941_s2 = inlined_call_operand.hbm [shape: f32[2,8,32], index: 2, kind: input, shape index: {}]   ;;  %s2942_s3 = inlined_call_operand.hbm [shape: f32[32,32], index: 3, kind: input, shape index: {}]   ;;  %s2943_s4 = inlined_call_operand.vmem [shape: f32[1,32], index: 4, kind: input, shape index: {}]   ;;  %s2944_s5 = inlined_call_operand.hbm [shape: f32[32,32], index: 5, kind: input, shape index: {}]   ;;  %s2945_s6 = inlined_call_operand.vmem [shape: f32[1,32], index: 6, kind: input, shape index: {}]   ;;  %s2946_s7 = inlined_call_operand.hbm [shape: f32[32,32], index: 7, kind: input, shape index: {}]   ;;  %s2947_s8 = inlined_call_operand.hbm [shape: f32[1,32], index: 8, kind: input, shape index: {}]   ;;  %s2948_s9 = inlined_call_operand.vmem [shape: f32[32,32], index: 9, kind: input, shape index: {}]   ;;  %s2949_s10 = inlined_call_operand.vmem [shape: f32[1,32], index: 10, kind: input, shape index: {}]   ;;  %s2950_s11 = inlined_call_operand.hbm [shape: f32[2,8,32], index: 11, kind: output, shape index: {}]  }
   0x1   :  { %2976 = sst [smem:[#allocation29_spill]] %s2940_s1 }
   0x2   :  { %2977 = sst [smem:[#allocation30_spill]] %s2942_s3 }
   0x3   :  { %2978 = sst [smem:[#allocation31_spill]] %s2946_s7 }
   0x4   :  { %2979 = sst [smem:[#allocation32_spill]] %s2948_s9 }
   0x5   :  { %2980 = sst [smem:[#allocation33_spill]] %s2949_s10 }
   0x6   :  { %2981 = sst [smem:[#allocation34_spill]] %s2950_s11 }
   0x7   :  { %16 = vsyncpa [#allocation4], 0 }
   0x8   :  { %18 = vsyncpa [#allocation4 + $0x1], 0 }
   0x9   :  { %19 = vsyncpa [#allocation7], 0 }
   0xa   :  { %21 = vsyncpa [#allocation7 + $0x1], 0 }
   0xb   :  { %22 = vsyncpa [#allocation10], 0 }
   0xc   :  { %23 = vsyncpa [#allocation13], 0 }
   0xd   :  { %24 = vsyncpa [#allocation5], 0 }
   0xe   :  { %26 = vsyncpa [#allocation5 + $0x1], 0  ;;  %s2452_s17 = smov 0   ;;  %s2454_s18 = smov 0  }
   0xf   :  { %s2456_s19 = smov 0   ;;  %s2458_s20 = smov 0  }
  0x10   :  { %s2460_s21 = smov 0   ;;  %s2462_s22 = smov 0  }
  0x11 LB: > { %2982 = sst [smem:[#allocation21_spill]] %s2351_s17  ;;  %s2483_s23 = sadd.s32 4294967295, %s2371_s22   ;;  %s2371_s22 = sphi %s2462_s22, %s32_s22   ;;  %s2367_s21 = sphi %s2460_s21, %s3029_s21   ;;  %s2363_s20 = sphi %s2458_s20, %s3028_s20   ;;  %s2359_s19 = sphi %s2456_s19, %s3032_s19   ;;  %s2355_s18 = sphi %s2454_s18, %s3031_s18   ;;  %s2351_s17 = sphi %s2452_s17, %s3030_s17  }
  0x12   : > { %2983 = sst [smem:[#allocation22_spill]] %s2363_s20  ;;  %p1746_p0 = scmp.ge.s32.totalorder %s2371_s22, 1 }
  0x13   : > { %2984 = sst [smem:[#allocation23_spill]] %s2367_s21  ;;  %p2960_p1 = scmp.eq.s32.totalorder %s2483_s23, 0 }
  0x14   : > { %2985 = sst [smem:[#allocation24_spill]] %s2371_s22  ;;  %p325_p2 = scmp.lt.s32.totalorder %s2371_s22, 3 }
  0x15   : > { %s2373_s25 = smov [#allocation9]   ;;  %s2374_s28 = smov [#allocation12]  }
  0x16   : > { %p2488_p3 = pnand %p1746_p0, %p325_p2  ;;  %s337_s26 = sshll.u32 %s2373_s25, 4  ;;  %s2492_s26 = int_to_ptr.vmem [resolvable:$true] %s337_s26 }
  0x17   : > { %s369_s29 = sshll.u32 %s2374_s28, 4  ;;  %s2988_s3 = sld [smem:[#allocation30_spill]]  ;;  %s2503_s29 = int_to_ptr.vmem [resolvable:$true] %s369_s29 }
  0x18   : > { %s2986_s24 = scalar_select %p2488_p3, 1, 0 }
  0x19   : > { %p1959_p4 = pneg %p2488_p3 }
  0x1b   : > { %p2499_p6 = pnand %p1959_p4, %p2960_p1 }
  0x1d   : > { %s2987_s27 = scalar_select %p2499_p6, 1, 0 }
  0x1e   : > { %s2075_s13 = scalar_lea.hbm %s2988_s3, 512  ;;  %p2513_p8 = pneg %p2499_p6 }
  0x1f   : > { %p2076_p7 = scmp.ne.s32.totalorder %s2988_s3, %s2075_s13  ;;  %p2082_p11 = scmp.lt.u32.totalorder %s2075_s13, %s2988_s3 }
  0x20   : > { %s2989_s16 = scalar_select %p2513_p8, 1, 0 }
  0x21   : > { %p2078_p9 = pnand %p2513_p8, %p2076_p7 }
  0x23   : > { %p2079_p10 = pneg %p2078_p9 }
  0x25   : > { %p2084_p12 = pnand %p2082_p11, %p2079_p10 }
  0x27   : > { %2087 = shalt.err (!%p2084_p12)
}
  0x28   : > { %s2088_s30 = scalar_lea.vmem %s2492_s26, 512  ;;  %p2096_p4 = scmp.lt.s32.totalorder %s2492_s26, %s2492_s26 }
  0x29   : > { %p2089_p13 = scmp.ne.s32.totalorder %s2492_s26, %s2088_s30  ;;  %p2097_p5 = scmp.lt.s32.totalorder %s2088_s30, %s2088_s30 }
  0x2b   : > { %p2091_p0 = pnand %p2089_p13, %p2513_p8  ;;  %p2098_p7 = por %p2097_p5, %p2096_p4 }
  0x2d   : > { %p2092_p2 = pneg %p2091_p0 }
  0x2f   : > { %p2099_p9 = pnand %p2098_p7, %p2092_p2 }
  0x31   : > { %2102 = shalt.err (!%p2099_p9)
}
  0x32   : > { %s2953_s12 = smov 128   ;;  %s2954_s13 = smov 8  }
  0x33   : > { %1962 = dma.hbm_to_vmem [thread:$0]  (!%p2499_p6), %s2988_s3, 512, %s2492_s26, [#allocation10], %s2953_s12, %s2953_s12, %s2954_s13  }
  0x34   : > { %s2990_s7 = sld [smem:[#allocation31_spill]] }
  0x3a   : > { %s2103_s30 = scalar_lea.hbm %s2990_s7, 512 }
  0x3b   : > { %p2104_p5 = scmp.ne.s32.totalorder %s2990_s7, %s2103_s30  ;;  %p2110_p12 = scmp.lt.u32.totalorder %s2103_s30, %s2990_s7 }
  0x3d   : > { %p2106_p10 = pnand %p2104_p5, %p2513_p8 }
  0x3f   : > { %p2107_p11 = pneg %p2106_p10 }
  0x41   : > { %p2112_p13 = pnand %p2110_p12, %p2107_p11 }
  0x43   : > { %2115 = shalt.err (!%p2112_p13)
}
  0x44   : > { %s2116_s26 = scalar_lea.vmem %s2503_s29, 512  ;;  %p2124_p7 = scmp.lt.s32.totalorder %s2503_s29, %s2503_s29 }
  0x45   : > { %p2117_p0 = scmp.ne.s32.totalorder %s2503_s29, %s2116_s26  ;;  %p2125_p9 = scmp.lt.s32.totalorder %s2116_s26, %s2116_s26 }
  0x47   : > { %p2119_p2 = pnand %p2117_p0, %p2513_p8  ;;  %p2126_p5 = por %p2125_p9, %p2124_p7 }
  0x49   : > { %p2120_p4 = pneg %p2119_p2 }
  0x4b   : > { %p2127_p10 = pnand %p2126_p5, %p2120_p4 }
  0x4d   : > { %2130 = shalt.err (!%p2127_p10)
}
  0x4e   : > { %1968 = dma.hbm_to_vmem [thread:$0]  (!%p2499_p6), %s2990_s7, 512, %s2503_s29, [#allocation13], %s2953_s12, %s2953_s12, %s2954_s13  }
  0x4f   : > { %s1745_s11 = sadd.s32 4294967294, %s2371_s22   ;;  %s44_s20 = sadd.s32 1, %s2367_s21 }
  0x50   : > { %p46_p11 = scmp.ge.s32.totalorder %s44_s20, 2  ;;  %s53_s14 = sadd.s32 1, %s2359_s19 }
  0x51   : > { %p60_p12 = scmp.ne.s32.totalorder %s2359_s19, %s2355_s18  ;;  %p61_p13 = scmp.eq.s32.totalorder %s2371_s22, 0 }
  0x52   : > { %s3034_s20 = smov (%p46_p11, %s44_s20), 0  ;;  %p66_p2 = scmp.ne.s32.totalorder %s2355_s18, %s2351_s17 }
  0x53   : > { %2991 = sst [smem:[#allocation25_spill]] %s3034_s20  ;;  %p2571_p0 = por %p61_p13, %p60_p12 }
  0x54   : > { %s48_s29 = ssub.s32 %s2367_s21, %s3034_s20  ;;  %p312_p4 = scmp.eq.s32.totalorder %s2483_s23, 1 }
  0x55   : > { %p51_p7 = scmp.eq.s32.totalorder %s48_s29, 0  ;;  %p2582_p9 = por %p2960_p1, %p66_p2 }
  0x56   : > { %p2586_p5 = por %p312_p4, %p60_p12  ;;  %p318_p10 = scmp.eq.s32.totalorder %s1745_s11, 1 }
  0x57   : > { %s2993_s25 = scalar_select %p2582_p9, 1, 0 }
  0x58   : > { %s2994_s28 = scalar_select %p2586_p5, 1, 0 }
  0x59   : > { %s2591_s30 = scalar_select %p51_p7, %s2359_s19, %s53_s14  }
  0x5a   : > { %2995 = sst [smem:[#allocation26_spill]] %s2994_s28  ;;  %p2593_p11 = por %p318_p10, %p66_p2 }
  0x5b   : > { %2996 = sst [smem:[#allocation27_spill]] %s2591_s30  ;;  %p1990_p13 = scmp.lt.s32.totalorder %s2371_s22, 2 }
  0x5c   : > { %s2997_s26 = scalar_select %p2593_p11, 1, 0 }
  0x5d   : > { %s2955_s9 = sand.u32 1, %s2359_s19   ;;  %s2600_s10 = sshll.u32 %s2367_s21, 7 }
  0x5e   : > { %2998 = sst [smem:[#allocation28_spill]] %s2997_s26  ;;  %s2604_s29 = sshll.u32 %s2955_s9, 3 }
  0x5f   : > { %p2608_p12 = pnand %p1990_p13, %p2571_p0  ;;  %s419_s11 = sand.u32 1, %s2371_s22  }
  0x60   : > { %s3000_s1 = sld [smem:[#allocation29_spill]]  ;;  %s423_s7 = scalar_lea.vmem [#allocation6], %s2604_s29 }
  0x61   : > { %s2999_s12 = scalar_select %p2608_p12, 1, 0 }
  0x62   : > { %s430_s9 = sshll.u32 %s423_s7, 4  ;;  %s2622_s15 = scalar_lea.sflag [#allocation7], %s419_s11  ;;  %s2620_s9 = int_to_ptr.vmem [resolvable:$true] %s430_s9 }
  0x63   : > { %p2628_p2 = pneg %p2608_p12 }
  0x65   : > { %s3001_s21 = scalar_select %p2628_p2, 1, 0 }
  0x66   : > { %s2617_s3 = scalar_lea.hbm %s3000_s1, %s2600_s10  ;;  %s2136_s30 = scalar_lea.hbm %s3000_s1, 256 }
  0x67   : > { %s2131_s20 = scalar_lea.hbm %s2617_s3, 128  ;;  %p2137_p10 = scmp.lt.u32.totalorder %s2617_s3, %s3000_s1 }
  0x68   : > { %p2132_p0 = scmp.ne.s32.totalorder %s2617_s3, %s2131_s20  ;;  %p2138_p13 = scmp.lt.u32.totalorder %s2136_s30, %s2131_s20 }
  0x69   : > { %p2140_p11 = scmp.lt.u32.totalorder %s2131_s20, %s2617_s3 }
  0x6a   : > { %p2134_p4 = pnand %p2628_p2, %p2132_p0  ;;  %p2139_p1 = por %p2138_p13, %p2137_p10 }
  0x6c   : > { %p2135_p7 = pneg %p2134_p4  ;;  %p2141_p5 = por %p2140_p11, %p2139_p1 }
  0x6e   : > { %p2142_p9 = pnand %p2141_p5, %p2135_p7 }
  0x70   : > { %2145 = shalt.err (!%p2142_p9)
}
  0x71   : > { %s2146_s11 = scalar_lea.vmem %s2620_s9, 128  ;;  %s2377_s13 = smov [#allocation6]  }
  0x72   : > { %p2147_p0 = scmp.ne.s32.totalorder %s2620_s9, %s2146_s11  ;;  %s2151_s14 = sshll.u32 %s2377_s13, 4  ;;  %s2152_s14 = int_to_ptr.vmem [resolvable:$false] %s2151_s14 }
  0x73   : > { %s2153_s22 = scalar_lea.vmem %s2152_s14, 256  ;;  %p2154_p6 = scmp.lt.s32.totalorder %s2620_s9, %s2152_s14 }
  0x74   : > { %p2149_p4 = pnand %p2147_p0, %p2628_p2  ;;  %p2155_p8 = scmp.lt.s32.totalorder %s2153_s22, %s2146_s11 }
  0x76   : > { %p2150_p3 = pneg %p2149_p4  ;;  %p2156_p10 = por %p2155_p8, %p2154_p6 }
  0x78   : > { %p2157_p13 = pnand %p2156_p10, %p2150_p3 }
  0x7a   : > { %2160 = shalt.err (!%p2157_p13)
}
  0x7b   : > { %1978 = dma.hbm_to_vmem [thread:$0]  (!%p2608_p12), %s2617_s3, 128, %s2620_s9, %s2622_s15  }
  0x7c   : > { %s2378_s20 = smov [#allocation11]   ;;  %s2379_s7 = smov [#allocation14]  }
  0x7d   : > { %s353_s30 = sshll.u32 %s2378_s20, 4  ;;  %s383_s1 = sshll.u32 %s2379_s7, 4  ;;  %s354_s30 = int_to_ptr.vmem [resolvable:$true] %s353_s30  ;;  %s384_s1 = int_to_ptr.vmem [resolvable:$true] %s383_s1 }
  0x7e   : > { %s2161_s14 = scalar_lea.hbm %s2944_s5, 512  ;;  %p3002_p3 = scmp.ne.s32.totalorder %s2989_s16, 0 }
  0x7f   : > { %p2162_p1 = scmp.ne.s32.totalorder %s2944_s5, %s2161_s14  ;;  %p2168_p9 = scmp.lt.u32.totalorder %s2161_s14, %s2944_s5 }
  0x81   : > { %p2164_p6 = pnand %p2162_p1, %p3002_p3 }
  0x83   : > { %p2165_p8 = pneg %p2164_p6 }
  0x85   : > { %p2170_p5 = pnand %p2168_p9, %p2165_p8 }
  0x87   : > { %2173 = shalt.err (!%p2170_p5)
}
  0x88   : > { %s2174_s3 = scalar_lea.vmem %s354_s30, 512  ;;  %p2182_p4 = scmp.lt.s32.totalorder %s354_s30, %s354_s30 }
  0x89   : > { %p2175_p11 = scmp.ne.s32.totalorder %s354_s30, %s2174_s3  ;;  %p2183_p10 = scmp.lt.s32.totalorder %s2174_s3, %s2174_s3 }
  0x8b   : > { %p2177_p7 = pnand %p2175_p11, %p3002_p3  ;;  %p2184_p13 = por %p2183_p10, %p2182_p4 }
  0x8d   : > { %p2178_p0 = pneg %p2177_p7 }
  0x8f   : > { %p2185_p12 = pnand %p2184_p13, %p2178_p0 }
  0x91   : > { %2188 = shalt.err (!%p2185_p12)
}
  0x92   : > { %p3003_p1 = scmp.ne.s32.totalorder %s2987_s27, 0  ;;  %s3004_s26 = smov 8  }
  0x93   : > { %s3005_s9 = smov 128   ;;  %s2189_s13 = scalar_lea.hbm %s2947_s8, 16 }
  0x94   : > { %1965 = dma.hbm_to_vmem [thread:$0]  (!%p3003_p1), %s2944_s5, 512, %s354_s30, [#allocation10], %s3005_s9, %s3005_s9, %s3004_s26  }
  0x95   : > { %p2190_p6 = scmp.ne.s32.totalorder %s2947_s8, %s2189_s13  ;;  %p2196_p9 = scmp.lt.u32.totalorder %s2189_s13, %s2947_s8 }
  0x97   : > { %p2192_p12 = pnand %p2190_p6, %p3002_p3 }
  0x99   : > { %p2193_p8 = pneg %p2192_p12 }
  0x9b   : > { %p2198_p5 = pnand %p2196_p9, %p2193_p8 }
  0x9d   : > { %2201 = shalt.err (!%p2198_p5)
}
  0x9e   : > { %s2202_s17 = scalar_lea.vmem %s384_s1, 16  ;;  %s2209_s30 = scalar_lea.vmem %s384_s1, 32 }
  0x9f   : > { %p2203_p11 = scmp.ne.s32.totalorder %s384_s1, %s2202_s17  ;;  %p2210_p4 = scmp.lt.s32.totalorder %s384_s1, %s384_s1 }
  0xa0   : > { %p2211_p10 = scmp.lt.s32.totalorder %s2209_s30, %s2202_s17 }
  0xa1   : > { %p2205_p7 = pnand %p2203_p11, %p3002_p3 }
  0xa2   : > { %p2212_p13 = por %p2211_p10, %p2210_p4 }
  0xa3   : > { %p2206_p0 = pneg %p2205_p7 }
  0xa5   : > { %p2213_p2 = pnand %p2212_p13, %p2206_p0 }
  0xa7   : > { %2216 = shalt.err (!%p2213_p2)
}
  0xa8   : > { %1971 = dma.hbm_to_vmem [thread:$0]  (!%p3003_p1), %s2947_s8, 16, %s384_s1, [#allocation13]  }
  0xa9   : > { %s2695_s20 = scalar_lea.hbm %s2939_s0, %s2600_s10  ;;  %s404_s7 = scalar_lea.vmem [#allocation3], %s2604_s29 }
  0xaa   : > { %s412_s27 = sshll.u32 %s404_s7, 4  ;;  %s2704_s11 = scalar_lea.hbm %s2941_s2, %s2600_s10  ;;  %s2698_s27 = int_to_ptr.vmem [resolvable:$true] %s412_s27 }
  0xab   : > { %s3006_s22 = sand.u32 1, %s2359_s19   ;;  %s2217_s3 = scalar_lea.hbm %s2695_s20, 128 }
  0xac   : > { %s401_s1 = scalar_lea.sflag [#allocation4], %s3006_s22  ;;  %p2218_p2 = scmp.ne.s32.totalorder %s2695_s20, %s2217_s3 }
  0xad   : > { %p3007_p3 = scmp.ne.s32.totalorder %s3001_s21, 0  ;;  %s2222_s26 = scalar_lea.hbm %s2939_s0, 256 }
  0xae   : > { %p2223_p12 = scmp.lt.u32.totalorder %s2695_s20, %s2939_s0  ;;  %p2224_p8 = scmp.lt.u32.totalorder %s2222_s26, %s2217_s3 }
  0xaf   : > { %p2220_p1 = pnand %p2218_p2, %p3007_p3  ;;  %p2226_p5 = scmp.lt.u32.totalorder %s2217_s3, %s2695_s20 }
  0xb0   : > { %p2225_p9 = por %p2224_p8, %p2223_p12 }
  0xb1   : > { %p2221_p6 = pneg %p2220_p1 }
  0xb2   : > { %p2227_p11 = por %p2226_p5, %p2225_p9 }
  0xb4   : > { %p2228_p7 = pnand %p2227_p11, %p2221_p6 }
  0xb6   : > { %2231 = shalt.err (!%p2228_p7)
}
  0xb7   : > { %s2232_s10 = scalar_lea.vmem %s2698_s27, 128  ;;  %s2380_s28 = smov [#allocation3]  }
  0xb8   : > { %p2233_p0 = scmp.ne.s32.totalorder %s2698_s27, %s2232_s10  ;;  %s2237_s7 = sshll.u32 %s2380_s28, 4  ;;  %s2238_s7 = int_to_ptr.vmem [resolvable:$false] %s2237_s7 }
  0xb9   : > { %s2239_s13 = scalar_lea.vmem %s2238_s7, 256  ;;  %p2240_p13 = scmp.lt.s32.totalorder %s2698_s27, %s2238_s7 }
  0xba   : > { %p2235_p4 = pnand %p2233_p0, %p3007_p3  ;;  %p2241_p2 = scmp.lt.s32.totalorder %s2239_s13, %s2232_s10 }
  0xbc   : > { %p2236_p10 = pneg %p2235_p4  ;;  %p2242_p1 = por %p2241_p2, %p2240_p13 }
  0xbe   : > { %p2243_p12 = pnand %p2242_p1, %p2236_p10 }
  0xc0   : > { %2246 = shalt.err (!%p2243_p12)
}
  0xc1   : > { %p3008_p6 = scmp.ne.s32.totalorder %s2999_s12, 0  ;;  %s441_s14 = scalar_lea.vmem [#allocation8], %s2604_s29 }
  0xc2   : > { %s448_s22 = sshll.u32 %s441_s14, 4  ;;  %s2247_s3 = scalar_lea.hbm %s2704_s11, 128  ;;  %s449_s22 = int_to_ptr.vmem [resolvable:$true] %s448_s22 }
  0xc3   : > { %1975 = dma.hbm_to_vmem [thread:$0]  (!%p3008_p6), %s2695_s20, 128, %s2698_s27, %s401_s1  }
  0xc4   : > { %p2248_p8 = scmp.ne.s32.totalorder %s2704_s11, %s2247_s3  ;;  %s2252_s26 = scalar_lea.hbm %s2941_s2, 256 }
  0xc5   : > { %p2253_p11 = scmp.lt.u32.totalorder %s2704_s11, %s2941_s2  ;;  %p2254_p7 = scmp.lt.u32.totalorder %s2252_s26, %s2247_s3 }
  0xc6   : > { %p2250_p9 = pnand %p2248_p8, %p3007_p3  ;;  %p2256_p4 = scmp.lt.u32.totalorder %s2247_s3, %s2704_s11 }
  0xc7   : > { %p2255_p0 = por %p2254_p7, %p2253_p11 }
  0xc8   : > { %p2251_p5 = pneg %p2250_p9 }
  0xc9   : > { %p2257_p10 = por %p2256_p4, %p2255_p0 }
  0xcb   : > { %p2258_p13 = pnand %p2257_p10, %p2251_p5 }
  0xcd   : > { %2261 = shalt.err (!%p2258_p13)
}
  0xce   : > { %s2262_s29 = scalar_lea.vmem %s449_s22, 128  ;;  %s2381_s20 = smov [#allocation8]  }
  0xcf   : > { %p2263_p2 = scmp.ne.s32.totalorder %s449_s22, %s2262_s29  ;;  %s2267_s27 = sshll.u32 %s2381_s20, 4  ;;  %s2268_s27 = int_to_ptr.vmem [resolvable:$false] %s2267_s27 }
  0xd0   : > { %s2269_s1 = scalar_lea.vmem %s2268_s27, 256  ;;  %p2270_p8 = scmp.lt.s32.totalorder %s449_s22, %s2268_s27 }
  0xd1   : > { %p2265_p1 = pnand %p2263_p2, %p3007_p3  ;;  %p2271_p9 = scmp.lt.s32.totalorder %s2269_s1, %s2262_s29 }
  0xd3   : > { %p2266_p12 = pneg %p2265_p1  ;;  %p2272_p6 = por %p2271_p9, %p2270_p8 }
  0xd5   : > { %p2273_p7 = pnand %p2272_p6, %p2266_p12 }
  0xd7   : > { %2276 = shalt.err (!%p2273_p7)
}
  0xd8   : > { %p3009_p11 = scmp.ne.s32.totalorder %s2999_s12, 0  ;;  %p3010_p5 = scmp.ne.s32.totalorder %s2986_s24, 0 }
  0xd9   : > { %s2751_s21 = sand.u32 (!%p3010_p5), 1, %s2355_s18   ;;  %p3011_p3 = scmp.ne.s32.totalorder (!%p3010_p5), %s2993_s25, 0 }
  0xda   : > { %1981 = dma.hbm_to_vmem [thread:$0]  (!%p3009_p11), %s2704_s11, 128, %s449_s22, %s2622_s15  }
  0xdb   : > { %457 = sbr.rel (%p3010_p5) target bundleno = 2153 (0x869), region = 64  ;;  %s2754_s10 = sshll.u32 (!%p3010_p5), %s2751_s21, 3 }
  0xdc   : > { %s460_s28 = scalar_lea.sflag (!%p3010_p5), [#allocation4], %s2751_s21  ;;  %s463_s7 = scalar_lea.vmem (!%p3010_p5), [#allocation3], %s2754_s10 }
  0xe2   : > { %2330 = dma.done.wait (%p3011_p3), %s460_s28, 128  }
  0xe3   : > { %2332 = vsyncadd (%p3011_p3), %s460_s28, 4294967168  ;;  %s468_s24 = sand.u32 1, %s2483_s23   ;;  %s472_s15 = scalar_lea.vmem [#allocation6], %s2754_s10 }
  0xe4   : > { %s469_s12 = scalar_lea.sflag [#allocation7], %s468_s24 }
  0xe5   : > { %2334 = dma.done.wait (%p3011_p3), %s469_s12, 256  }
  0xe6   : > { %2336 = vsyncadd (%p3011_p3), %s469_s12, 4294967040  ;;  %s481_s11 = scalar_lea.vmem [#allocation8], %s2754_s10  ;;  %p3012_p6 = scmp.eq.s32.totalorder %s2483_s23, 0 }
  0xe8   : > { %2338 = dma.done.wait (%p3012_p6), [#allocation10], 1024   ;;  %p3013_p0 = pmov %p3012_p6 }
  0xea   : > { %2340 = vsyncadd (%p3013_p0), [#allocation10], 4294966272  ;;  %p3014_p4 = pmov %p3013_p0 }
  0xeb   : > { %p3015_p10 = pmov %p3013_p0 }
  0xec   : > { %2342 = dma.done.wait (%p3014_p4), [#allocation13], 528  }
  0xed   : > { %2344 = vsyncadd (%p3015_p10), [#allocation13], 4294966768  ;;  %v2382_v0 = vmov 0.0|0.0   ;;  %vm2383_vm0 = vmmov 0   ;;  %v2384_v1 = vmov 0.0   ;;  %v634_v2 = vld [vmem:[#allocation11] sm:$0xff] }
  0xee   : > { %1917 = vmatprep.subr.bf16.mxu1 %v2382_v0  ;;  %1911 = vmatprep.subr.bf16.mxu0 %v2382_v0  ;;  %v635_v3 = vld [vmem:[#allocation11 + $0x8] sm:$0xff]  ;;  %v549_v4 = vld [vmem:[#allocation9] sm:$0xff]  ;;  %v636_v7 = vld [vmem:[#allocation11 + $0x10] sm:$0xff]  ;;  %vm560_vm1 = vcmask 261120   ;;  %vm802_vm2 = vcmask 64512   ;;  %s2385_s22 = smov 120  }
  0xef   : > { %1846 = vmatprep.mubr.msk.f32.mxu1 %vm2383_vm0, %v2384_v1  ;;  %1835 = vmatprep.mubr.msk.f32.mxu0 %vm2383_vm0, %v2384_v1  ;;  %v1918_v5 = vpack.c.bf16 %v635_v3, %v634_v2  ;;  %v550_v6 = vld [vmem:[#allocation9 + $0x8] sm:$0xff]  ;;  %v637_v8 = vld [vmem:[#allocation11 + $0x18] sm:$0xff]  ;;  %v551_v10 = vld [vmem:[#allocation9 + $0x10] sm:$0xff]  ;;  %s2386_s3 = smov 112   ;;  %s2387_s17 = smov 104   ;;  %vm1136_vm3 = vcmask 130112  }
  0xf0   : > { %v1912_v9 = vpack.c.bf16 %v550_v6, %v549_v4  ;;  %v552_v11 = vld [vmem:[#allocation9 + $0x18] sm:$0xff]  ;;  %v1921_v12 = vpack.c.bf16 %v637_v8, %v636_v7  ;;  %v547_v14 = vld [vmem:[%s472_s15] sm:$0xff]  ;;  %v720_v26 = vld [vmem:[#allocation12 + $0x10] sm:$0xff]  ;;  %s3016_s9 = sld [smem:[#allocation32_spill]]  ;;  %s2389_s24 = smov 16   ;;  %vm1308_vm4 = vcmask 195712  }
  0xf1   : > { %1919 = vmatpush3.bf16.msra.mxu1 %v1918_v5  ;;  %v1915_v13 = vpack.c.bf16 %v552_v11, %v551_v10  ;;  %v546_v15 = vld [vmem:[%s463_s7] sm:$0xff]  ;;  %v1769_v16 = vld [vmem:[%s2945_s6] ss:$0 sm:$0xff]  ;;  %v718_v24 = vld [vmem:[#allocation12] sm:$0xff]  ;;  %s2388_s7 = smov 8   ;;  %s3017_s12 = sld [smem:[#allocation22_spill]] }
  0xf2   : > { %1913 = vmatpush3.bf16.msra.mxu0 %v1912_v9  ;;  %1920 = vmatprep.subr.bf16.mxu1 %v2382_v0  ;;  %v1767_v17 = vld [vmem:[%s2943_s4] ss:$0 sm:$0xff]  ;;  %v721_v28 = vld [vmem:[#allocation12 + $0x18] sm:$0xff]  ;;  %v1771_v40 = vld [vmem:[#allocation14] ss:$0 sm:$0xff]  ;;  %s2390_s15 = smov 24  }
  0xf3   : > { %1914 = vmatprep.subr.bf16.mxu0 %v2382_v0  ;;  %v719_v25 = vld [vmem:[#allocation12 + $0x8] sm:$0xff]  ;;  %v1927_v29 = vpack.c.bf16 %v721_v28, %v720_v26  ;;  %v548_v30 = vld [vmem:[%s481_s11] sm:$0xff]  ;;  %vm1480_vm5 = vcmask 261312   ;;  %s3018_s11 = sld [smem:[#allocation26_spill]]  ;;  %s3020_s26 = sld [smem:[#allocation34_spill]] }
  0xf4   : > { %v1924_v27 = vpack.c.bf16 %v719_v25, %v718_v24  ;;  %s3019_s13 = sld [smem:[#allocation33_spill]]  ;;  %s1569_s29 = scalar_lea.sflag [#allocation5], %s2751_s21 }
  0xf5   : > { %1922 = vmatpush3.bf16.msra.mxu1 %v1921_v12 }
  0xf6   : > { %1916 = vmatpush3.bf16.msra.mxu0 %v1915_v13  ;;  %1860 = vmatprep.subr.mxu1 %v2384_v1 }
  0xf7   : > { %1923 = vmatprep.subr.bf16.mxu0 %v2382_v0  ;;  %s1788_s14 = sshll.u32 %s3017_s12, 7 }
  0xf8   : > { %1847 = vmatmul.mubr.msk.f32.vlgmr.msra.gmra.mrb[0].mxu1 %vm560_vm1, %v547_v14 }
  0xf9   : > { %1836 = vmatmul.mubr.msk.f32.vlgmr.msra.gmra.mrb[0].mxu0 %vm560_vm1, %v546_v15  ;;  %1862 = vmatprep.mubr.msk.f32.mxu1 %vm2383_vm0, %v2384_v1  ;;  %s2889_s16 = scalar_lea.hbm %s3020_s26, %s1788_s14  ;;  %p3021_p2 = scmp.ne.s32.totalorder %s3018_s11, 0 }
  0xfa   : > { %1857 = vmatprep.mubr.msk.f32.mxu0 %vm2383_vm0, %v2384_v1  ;;  %1925 = vmatpush3.bf16.msra.mxu0 %v1924_v27 }
  0xfb   : > { %1926 = vmatprep.subr.bf16.mxu0 %v2382_v0 }
  0xfe   : > { %1928 = vmatpush3.bf16.msra.mxu0 %v1927_v29 }
  0xff   : > { %1880 = vmatprep.subr.mxu0 %v2384_v1 }
 0x101   : > { %1858 = vmatmul.mubr.msk.f32.vlgmr.msra.gmra.mrb[2].mxu0 %vm560_vm1, %v548_v30 }
 0x102   : > { %1882 = vmatprep.mubr.msk.f32.mxu0 %vm2383_vm0, %v2384_v1 }
 0x1cb   : > { %v714_v18 = vpop.f32.mrb[0].mxu1 }
 0x1cc   : > { %v715_v19 = vadd.f32 %v1769_v16, %v714_v18  ;;  %v1848_v20 = vpop.f32.mrb[1].mxu1  ;;  %v630_v21 = vpop.f32.mrb[0].mxu0 }
 0x1cd   : > { %v631_v22 = vadd.f32 %v1767_v17, %v630_v21  ;;  %v1837_v23 = vpop.f32.mrb[1].mxu0 }
 0x1ce   : > { %967 = vrot.lane.b32.xlu1 %v715_v19, %s2385_s22  ;;  %1861 = vmatpush3.xpose.msk.msra.mxu1 %vm802_vm2, %v715_v19 }
 0x1cf   : > { %1865 = vmatprep.subr.mxu1 %v2384_v1 }
 0x1d1   : > { %1863 = vmatmul.mubr.msk.f32.vlgmr.msra.gmra.mrb[2].mxu1 %vm802_vm2, %v631_v22 }
 0x1d2   : > { %965 = vrot.lane.b32.xlu1 %v631_v22, %s2385_s22  ;;  %1867 = vmatprep.mubr.msk.f32.mxu1 %vm2383_vm0, %v2384_v1 }
 0x1d4   : > { %v798_v41 = vpop.f32.mrb[2].mxu0 }
 0x1d5   : > { %v2822_v42 = vadd.f32 %v1771_v40, %v798_v41  ;;  %v1859_v43 = vpop.f32.mrb[3].mxu0 }
 0x1d6   : > { %1138 = vrot.lane.b32.xlu1 %v631_v22, %s2386_s3 }
 0x1d7   : > { %1866 = vmatpush3.msra.mxu1 %v2822_v42 }
 0x1d8   : > { %1870 = vmatprep.subr.mxu1 %v2384_v1 }
 0x1da   : > { %1312 = vrot.lane.b32.xlu1 %v715_v19, %s2387_s17 }
 0x1de   : > { %1310 = vrot.lane.b32.xlu1 %v631_v22, %s2387_s17 }
 0x240   : > { %v968_v44 = vpop.permute.xlu1 %967 }
 0x244   : > { %v966_v45 = vpop.permute.xlu1 %965 }
 0x248   : > { %v1139_v46 = vpop.permute.xlu1 %1138 }
 0x24c   : > { %v1313_v49 = vpop.permute.xlu1 %1312 }
 0x250   : > { %v1311_v51 = vpop.permute.xlu1 %1310 }
 0x2a4   : > { %v875_v31 = vpop.f32.mrb[2].mxu1 }
 0x2a5   : > { %v879_v32 = vmul.f32 0.35355338, %v875_v31  ;;  %v1864_v33 = vpop.f32.mrb[3].mxu1 }
 0x2a6   : > { %v1484_v33 = vld [vmem:[%s3016_s9 + $0x8] sm:$0xff] }
 0x2a7   : > { %v880_v34 = vsel %vm802_vm2, %v879_v32, -inf }
 0x2a8   : > { %881 = vmax.xlane.f32.xlu0 %v880_v34 }
 0x335   : > { %v882_v35 = vpop.xlane.xlu0 %881 }
 0x336   : > { %v883_v36 = vsub.f32 %v879_v32, %v882_v35  ;;  %v1483_v32 = vld [vmem:[%s3016_s9] sm:$0xff]  ;;  %v1485_v35 = vld [vmem:[%s3016_s9 + $0x10] sm:$0xff] }
 0x337   : > { %v1930_v34 = vpack.c.bf16 %v1484_v33, %v1483_v32 }
 0x338   : > { %v884_v37 = vmul.f32 1.442695, %v883_v36 }
 0x33a   : > { %2059 = vpow2.f32 %v884_v37 }
 0x344   : > { %v2060_v38 = vpop.eup %2059 }
 0x345   : > { %v886_v39 = vsel %vm802_vm2, %v2060_v38, 0.0 }
 0x346   : > { %887 = vadd.xlane.f32.xlu0 %v886_v39 }
 0x35c   : > { %1140 = vrot.lane.b32.xlu0 %v715_v19, %s2386_s3 }
 0x3d3   : > { %v888_v47 = vpop.xlane.xlu0 %887 }
 0x3d4   : > { %2061 = vrcp.f32 %v888_v47 }
 0x3d7   : > { %v1141_v48 = vpop.permute.xlu0 %1140 }
 0x3d8   : > { %1881 = vmatpush3.xpose.msk.msra.mxu0 %vm802_vm2, %v1141_v48 }
 0x3d9   : > { %1890 = vmatprep.subr.mxu0 %v2384_v1 }
 0x3db   : > { %1883 = vmatmul.mubr.msk.f32.vlgmr.msra.gmra.mrb[4].mxu0 %vm802_vm2, %v1139_v46  ;;  %v1785_v46 = vld [vmem:[%s3019_s13] ss:$0 sm:$0xff] }
 0x3dc   : > { %1891 = vmatpush3.xpose.msk.msra.mxu0 %vm802_vm2, %v1313_v49  ;;  %1892 = vmatprep.mubr.msk.f32.mxu0 %vm2383_vm0, %v2384_v1 }
 0x3dd   : > { %1929 = vmatprep.subr.bf16.mxu0 %v2382_v0 }
 0x3de   : > { %v2062_v50 = vpop.eup %2061 }
 0x3df   : > { %v890_v52 = vmul.f32 %v2062_v50, %v2060_v38  ;;  %1893 = vmatmul.mubr.msk.f32.vlgmr.msra.gmra.mrb[6].mxu0 %vm802_vm2, %v1311_v51 }
 0x3e0   : > { %1908 = vmatprep.mubr.msk.f32.mxu0 %vm2383_vm0, %v2384_v1  ;;  %1931 = vmatpush3.bf16.msra.mxu0 %v1930_v34 }
 0x3e1   : > { %1868 = vmatmul.mubr.msk.f32.vlgmr.msra.gmra.mrb[4].mxu1 %vm802_vm2, %v890_v52  ;;  %1932 = vmatprep.subr.bf16.mxu0 %v2382_v0 }
 0x3e2   : > { %1871 = vmatpush3.xpose.msk.msra.mxu1 %vm802_vm2, %v968_v44  ;;  %1872 = vmatprep.mubr.msk.f32.mxu1 %vm2383_vm0, %v2384_v1 }
 0x3e3   : > { %1875 = vmatprep.subr.mxu1 %v2384_v1 }
 0x3e5   : > { %1873 = vmatmul.mubr.msk.f32.vlgmr.msra.gmra.mrb[6].mxu1 %vm802_vm2, %v966_v45 }
 0x3e6   : > { %1877 = vmatprep.mubr.msk.f32.mxu1 %vm2383_vm0, %v2384_v1 }
 0x4ae   : > { %v1212_v53 = vpop.f32.mrb[4].mxu0 }
 0x4af   : > { %v1216_v54 = vmul.f32 0.35355338, %v1212_v53  ;;  %v1884_v55 = vpop.f32.mrb[5].mxu0 }
 0x4b1   : > { %v1217_v56 = vsel %vm802_vm2, %v1216_v54, -inf }
 0x4b2   : > { %1218 = vmax.xlane.f32.xlu0 %v1217_v56  ;;  %v1384_v57 = vpop.f32.mrb[6].mxu0 }
 0x4b3   : > { %v1894_v58 = vpop.f32.mrb[7].mxu0  ;;  %v1388_v2 = vmul.f32 0.35355338, %v1384_v57 }
 0x4b4   : > { %v960_v59 = vpop.f32.mrb[4].mxu1 }
 0x4b5   : > { %964 = vst.msk [vmem:[#allocation2] sm:$0xff] %vm802_vm2, %v960_v59  ;;  %v1869_v60 = vpop.f32.mrb[5].mxu1  ;;  %v1389_v4 = vsel %vm802_vm2, %v1388_v2, -inf }
 0x4b8   : > { %v1039_v61 = vpop.f32.mrb[6].mxu1 }
 0x4b9   : > { %v1043_v62 = vmul.f32 0.35355338, %v1039_v61  ;;  %v1874_v63 = vpop.f32.mrb[7].mxu1 }
 0x4bb   : > { %v1044_v3 = vsel %vm802_vm2, %v1043_v62, -inf }
 0x4bc   : > { %1045 = vmax.xlane.f32.xlu1 %v1044_v3 }
 0x4c0   : > { %1390 = vmax.xlane.f32.xlu1 %v1389_v4 }
 0x53f   : > { %v1219_v5 = vpop.xlane.xlu0 %1218 }
 0x540   : > { %v1220_v6 = vsub.f32 %v1216_v54, %v1219_v5 }
 0x542   : > { %v1221_v7 = vmul.f32 1.442695, %v1220_v6 }
 0x544   : > { %2063 = vpow2.f32 %v1221_v7 }
 0x549   : > { %v1046_v8 = vpop.xlane.xlu1 %1045 }
 0x54a   : > { %v1047_v16 = vsub.f32 %v1043_v62, %v1046_v8 }
 0x54c   : > { %v1048_v17 = vmul.f32 1.442695, %v1047_v16 }
 0x54d   : > { %v1391_v9 = vpop.xlane.xlu1 %1390 }
 0x54e   : > { %v2064_v10 = vpop.eup %2063  ;;  %v1392_v11 = vsub.f32 %v1388_v2, %v1391_v9 }
 0x54f   : > { %v1223_v12 = vsel %vm802_vm2, %v2064_v10, 0.0 }
 0x550   : > { %v1393_v13 = vmul.f32 1.442695, %v1392_v11  ;;  %1224 = vadd.xlane.f32.xlu0 %v1223_v12 }
 0x552   : > { %2065 = vpow2.f32 %v1393_v13 }
 0x553   : > { %2067 = vpow2.f32 %v1048_v17 }
 0x55c   : > { %v2066_v14 = vpop.eup %2065 }
 0x55d   : > { %v1395_v15 = vsel %vm802_vm2, %v2066_v14, 0.0  ;;  %v2068_v18 = vpop.eup %2067 }
 0x55e   : > { %1396 = vadd.xlane.f32.xlu1 %v1395_v15  ;;  %v1050_v19 = vsel %vm802_vm2, %v2068_v18, 0.0 }
 0x566   : > { %1056 = vrot.lane.b32.xlu0 %v2822_v42, %s2385_s22  ;;  %s545_s22 = scalar_lea.vmem [#allocation15], %s2754_s10  ;;  %s2391_s10 = smov [#allocation15]  }
 0x567   : > { %s2281_s27 = sshll.u32 %s2391_s10, 4  ;;  %s2282_s27 = int_to_ptr.vmem [resolvable:$false] %s2281_s27 }
 0x568   : > { %s2283_s1 = scalar_lea.vmem %s2282_s27, 256 }
 0x56f   : > { %1228 = vrot.lane.b32.xlu1 %v2822_v42, %s2386_s3  ;;  %s1583_s3 = sshll.u32 %s545_s22, 4  ;;  %s2891_s3 = int_to_ptr.vmem [resolvable:$true] %s1583_s3 }
 0x570   : > { %s2277_s20 = scalar_lea.vmem %s2891_s3, 128  ;;  %p2284_p8 = scmp.lt.s32.totalorder %s2891_s3, %s2282_s27 }
 0x571   : > { %p2278_p13 = scmp.ne.s32.totalorder %s2891_s3, %s2277_s20  ;;  %p2285_p9 = scmp.lt.s32.totalorder %s2283_s1, %s2277_s20 }
 0x573   : > { %p2279_p1 = pnand %p2278_p13, %p3021_p2  ;;  %p2286_p7 = por %p2285_p9, %p2284_p8 }
 0x575   : > { %p2280_p12 = pneg %p2279_p1 }
 0x577   : > { %p2287_p11 = pnand %p2286_p7, %p2280_p12 }
 0x593   : > { %1051 = vadd.xlane.f32.xlu1 %v1050_v19 }
 0x5a4   : > { %1400 = vrot.lane.b32.xlu1 %v2822_v42, %s2387_s17 }
 0x5dd   : > { %v1225_v20 = vpop.xlane.xlu0 %1224 }
 0x5e1   : > { %v1057_v21 = vpop.permute.xlu0 %1056 }
 0x5e2   : > { %1876 = vmatpush3.msra.mxu1 %v1057_v21 }
 0x5e3   : > { %1885 = vmatprep.subr.mxu1 %v2384_v1 }
 0x5eb   : > { %v1397_v22 = vpop.xlane.xlu1 %1396 }
 0x5ef   : > { %v1229_v23 = vpop.permute.xlu1 %1228 }
 0x620   : > { %v1052_v24 = vpop.xlane.xlu1 %1051 }
 0x621   : > { %2069 = vrcp.f32 %v1052_v24 }
 0x622   : > { %2071 = vrcp.f32 %v1225_v20 }
 0x623   : > { %2073 = vrcp.f32 %v1397_v22 }
 0x624   : > { %v1401_v30 = vpop.permute.xlu1 %1400 }
 0x62b   : > { %v2070_v25 = vpop.eup %2069 }
 0x62c   : > { %v1054_v26 = vmul.f32 %v2070_v25, %v2068_v18  ;;  %v2072_v27 = vpop.eup %2071 }
 0x62d   : > { %v1227_v28 = vmul.f32 %v2072_v27, %v2064_v10  ;;  %v2074_v29 = vpop.eup %2073 }
 0x62e   : > { %1878 = vmatmul.mubr.msk.f32.vlgmr.msra.gmra.mrb[8].mxu1 %vm802_vm2, %v1054_v26  ;;  %v1399_v31 = vmul.f32 %v2074_v29, %v2066_v14 }
 0x62f   : > { %1886 = vmatpush3.msra.mxu1 %v1229_v23  ;;  %1887 = vmatprep.mubr.msk.f32.mxu1 %vm2383_vm0, %v2384_v1 }
 0x630   : > { %1895 = vmatprep.subr.mxu1 %v2384_v1 }
 0x632   : > { %1888 = vmatmul.mubr.msk.f32.vlgmr.msra.gmra.mrb[10].mxu1 %vm802_vm2, %v1227_v28 }
 0x633   : > { %1896 = vmatpush3.msra.mxu1 %v1401_v30  ;;  %1897 = vmatprep.mubr.msk.f32.mxu1 %vm2383_vm0, %v2384_v1  ;;  %v1486_v1 = vld [vmem:[%s3016_s9 + $0x18] sm:$0xff] }
 0x634   : > { %v1933_v36 = vpack.c.bf16 %v1486_v1, %v1485_v35 }
 0x636   : > { %1898 = vmatmul.mubr.msk.f32.vlgmr.msra.gmra.mrb[12].mxu1 %vm802_vm2, %v1399_v31  ;;  %1934 = vmatpush3.bf16.msra.mxu0 %v1933_v36 }
 0x701   : > { %v1128_v37 = vpop.f32.mrb[8].mxu1 }
 0x702   : > { %1133 = vrot.lane.b32.xlu0 %v1128_v37, %s2388_s7  ;;  %v1879_v38 = vpop.f32.mrb[9].mxu1 }
 0x705   : > { %v1300_v39 = vpop.f32.mrb[10].mxu1 }
 0x706   : > { %1305 = vrot.lane.b32.xlu1 %v1300_v39, %s2389_s24  ;;  %v1889_v40 = vpop.f32.mrb[11].mxu1 }
 0x709   : > { %v1472_v41 = vpop.f32.mrb[12].mxu1 }
 0x70a   : > { %1477 = vrot.lane.b32.xlu0 %v1472_v41, %s2390_s15  ;;  %v1899_v42 = vpop.f32.mrb[13].mxu1 }
 0x774   : > { %v1134_v43 = vpop.permute.xlu0 %1133 }
 0x775   : > { %1137 = vst.msk [vmem:[#allocation2] sm:$0xff] %vm1136_vm3, %v1134_v43 }
 0x778   : > { %v1306_v0 = vpop.permute.xlu1 %1305 }
 0x779   : > { %1309 = vst.msk [vmem:[#allocation2] sm:$0xff] %vm1308_vm4, %v1306_v0 }
 0x77c   : > { %v1478_v44 = vpop.permute.xlu0 %1477 }
 0x77d   : > { %1481 = vst.msk [vmem:[#allocation2] sm:$0xff] %vm1480_vm5, %v1478_v44 }
 0x784   : > { %v1482_v45 = vld [vmem:[#allocation2] sm:$0xff] }
 0x785   : > { %1909 = vmatmul.mubr.msk.f32.vlgmr.msra.gmra.mrb[8].mxu0 %vm560_vm1, %v1482_v45 }
 0x858   : > { %v1563_v47 = vpop.f32.mrb[8].mxu0 }
 0x859   : > { %v1564_v48 = vadd.f32 %v1785_v46, %v1563_v47  ;;  %v1910_v49 = vpop.f32.mrb[9].mxu0 }
 0x85b   : > { %1567 = vst.msk [vmem:[%s545_s22] sm:$0xff] %vm560_vm1, %v1564_v48 }
 0x85c   : > { %2290 = shalt.err (!%p2287_p11)
}
 0x85d   : > { %s2291_s21 = scalar_lea.hbm %s2889_s16, 128  ;;  %s2295_s24 = scalar_lea.hbm %s3020_s26, 256 }
 0x85e   : > { %p2292_p5 = scmp.ne.s32.totalorder %s2889_s16, %s2291_s21  ;;  %p2296_p0 = scmp.lt.u32.totalorder %s2889_s16, %s3020_s26 }
 0x85f   : > { %p2297_p4 = scmp.lt.u32.totalorder %s2295_s24, %s2291_s21  ;;  %p2299_p13 = scmp.lt.u32.totalorder %s2291_s21, %s2889_s16 }
 0x860   : > { %p2293_p3 = pnand %p2292_p5, %p3021_p2 }
 0x861   : > { %p2298_p10 = por %p2297_p4, %p2296_p0 }
 0x862   : > { %p2294_p6 = pneg %p2293_p3 }
 0x863   : > { %p2300_p1 = por %p2299_p13, %p2298_p10 }
 0x865   : > { %p2301_p12 = pnand %p2300_p1, %p2294_p6 }
 0x867   : > { %2304 = shalt.err (!%p2301_p12)
}
 0x868   : > { %1957 = dma.vmem_to_hbm [thread:$0]  (%p3021_p2), %s2891_s3, 128, %s2889_s16, %s1569_s29  }
 0x869 PF: > { %s3022_s23 = sld [smem:[#allocation21_spill]]  ;;  %s3023_s25 = sld [smem:[#allocation28_spill]] }
 0x86a   : > { %s3024_s13 = sld [smem:[#allocation24_spill]] }
 0x86f   : > { %s1595_s14 = sand.u32 1, %s3022_s23   ;;  %p3025_p8 = scmp.ne.s32.totalorder %s3023_s25, 0 }
 0x870   : > { %p3026_p9 = scmp.ge.s32.totalorder %s3024_s13, 2  ;;  %s1596_s22 = scalar_lea.sflag [#allocation5], %s1595_s14 }
 0x872   : > { %p1983_p7 = pnand %p3026_p9, %p3025_p8 }
 0x874   : > { %2346 = dma.done.wait (!%p1983_p7), %s1596_s22, 128  }
 0x875   : > { %2348 = vsyncadd (!%p1983_p7), %s1596_s22, 4294967168  ;;  %s32_s22 = sadd.s32 1, %s3024_s13   ;;  %s3027_s11 = sld [smem:[#allocation27_spill]] }
 0x876   : > { %p29_p11 = scmp.ge.s32.totalorder %s32_s22, 4   ;;  %s3028_s20 = sld [smem:[#allocation23_spill]] }
 0x877   : > { %s3029_s21 = sld [smem:[#allocation25_spill]]  ;;  %s3030_s17 = smov %s2355_s18 }
 0x878   : > { %s3031_s18 = smov %s2359_s19  ;;  %31 = sbr.rel (!%p29_p11) target bundleno = 17 (0x11), region = 149 }
 0x87b   : > { %s3032_s19 = smov %s3027_s11 }
 0x87f   :  { %1601 = vsyncpa [#allocation4], 1 }
 0x880   :  { %1603 = vsyncpa [#allocation4 + $0x1], 1 }
 0x881   :  { %1604 = vsyncpa [#allocation7], 1 }
 0x882   :  { %1606 = vsyncpa [#allocation7 + $0x1], 1 }
 0x883   :  { %1607 = vsyncpa [#allocation10], 1 }
 0x884   :  { %1608 = vsyncpa [#allocation13], 1 }
 0x885   :  { %1609 = vsyncpa [#allocation5], 1 }
 0x886   :  { %1611 = vsyncpa [#allocation5 + $0x1], 1 }

</bundles_post_ra>
